<compile_context>
chip_gen: v5e
topology: v5e:2x2
jax: 0.10.0
libtpu: 0.0.40
codegen_flags: <defaults>
</compile_context>

<pallas_src>
import jax
import jax.numpy as jnp
from jax.experimental import pallas as pl
from jax.experimental.pallas import tpu as pltpu

LANE = 128


def critic_adv_kernel(x_ref, w1_ref, b1_ref, w2_ref, b2_ref,
                      w3_ref, b3_ref, w4_ref, b4_ref, o_ref):
    def linear(x, w_ref, b_ref):
        # Cast activations to the weight dtype (no-op for f32, enables bf16
        # MXU rate if bf16 weights are supplied); accumulate in f32.
        y = jnp.dot(x.astype(w_ref.dtype), w_ref[...],
                    preferred_element_type=jnp.float32)
        return y + b_ref[...].astype(jnp.float32)

    h = jnp.maximum(linear(x_ref[...], w1_ref, b1_ref), 0.0)   # L1 + ReLU
    h = jnp.maximum(linear(h, w2_ref, b2_ref), 0.0)            # L2 + ReLU
    h = jnp.maximum(linear(h, w3_ref, b3_ref), 0.0)            # L3 + ReLU
    h = linear(h, w4_ref, b4_ref)                              # L4 (no act)
    o_ref[...] = h.astype(o_ref.dtype)


def critic_adv_forward(state, params, *, batch_tile=None):
    """state: [B, state_dim] f32. params: dict with w1..w4 ([in,out]) and b1..b4 ([1,out])."""
    B, state_dim = state.shape
    mid_dim = params["w1"].shape[1]
    out_dim = params["w4"].shape[1]                      # == 1 for CriticAdv
    out_pad = ((out_dim + LANE - 1) // LANE) * LANE      # lane-dense output slab

    # Lane-pad the final layer so output writes are full-width (unmasked) stores.
    w4 = jnp.pad(params["w4"], ((0, 0), (0, out_pad - out_dim)))
    b4 = jnp.pad(params["b4"], ((0, 0), (0, out_pad - out_dim)))

    if batch_tile is None:
        batch_tile = B
        for cand in (256, 512, 128, 64, 32, 16, 8):
            if B % cand == 0:
                batch_tile = cand
                break
    assert B % batch_tile == 0, "batch must be divisible by batch_tile"
    assert batch_tile == B or batch_tile % 8 == 0, \
        "batch_tile must be a multiple of 8 (sublane) unless it equals batch"

    # Weights/biases never change block index across the grid -> single-buffer.
    def w_spec(shape):
        return pl.BlockSpec(shape, lambda i: (0, 0),
                            pipeline_mode=pl.Buffered(1))

    x_spec = pl.BlockSpec((batch_tile, state_dim), lambda i: (i, 0))
    o_spec = pl.BlockSpec((batch_tile, out_pad), lambda i: (i, 0))

    # VMEM budget: resident (single-buffered) weights + biases,
    # double-buffered x/o tiles, and live f32 activation intermediates.
    wbytes = jnp.dtype(params["w1"].dtype).itemsize
    weight_bytes = (state_dim * mid_dim + 2 * mid_dim * mid_dim
                    + mid_dim * out_pad) * wbytes
    bias_bytes = (3 * mid_dim + out_pad) * 4
    io_bytes = 2 * batch_tile * (state_dim + out_pad) * 4
    act_bytes = 2 * batch_tile * mid_dim * 4
    vmem_estimate = weight_bytes + bias_bytes + io_bytes + act_bytes
    vmem_limit = int(min(64 << 20, max(16 << 20, 2 * vmem_estimate)))

    flops = 2 * B * (state_dim * mid_dim + 2 * mid_dim * mid_dim
                     + mid_dim * out_pad)
    bytes_accessed = (B * state_dim * 4 + weight_bytes + bias_bytes
                      + B * out_pad * 4)

    out = pl.pallas_call(
        critic_adv_kernel,
        out_shape=jax.ShapeDtypeStruct((B, out_pad), jnp.float32),
        grid_spec=pltpu.PrefetchScalarGridSpec(
            num_scalar_prefetch=0,
            grid=(B // batch_tile,),
            in_specs=[
                x_spec,
                w_spec((state_dim, mid_dim)), w_spec((1, mid_dim)),
                w_spec((mid_dim, mid_dim)),   w_spec((1, mid_dim)),
                w_spec((mid_dim, mid_dim)),   w_spec((1, mid_dim)),
                w_spec((mid_dim, out_pad)),   w_spec((1, out_pad)),
            ],
            out_specs=o_spec,
        ),
        compiler_params=pltpu.CompilerParams(
            dimension_semantics=("parallel",),
            vmem_limit_bytes=vmem_limit,
        ),
        cost_estimate=pl.CostEstimate(
            flops=flops, transcendentals=0, bytes_accessed=bytes_accessed),
    )(state,
      params["w1"], params["b1"],
      params["w2"], params["b2"],
      params["w3"], params["b3"],
      w4, b4)

    # Slice the lane-padded slab back to the true critic output width (1).
    return out[:, :out_dim]


def init_params(key, state_dim, mid_dim, out_dim=1, weight_dtype=jnp.float32):
    """PyTorch-Linear-style uniform init; weights stored [in, out], biases [1, out] f32."""
    def linear(k, fan_in, fan_out):
        kw, kb = jax.random.split(k)
        bound = 1.0 / (fan_in ** 0.5)
        w = jax.random.uniform(kw, (fan_in, fan_out), jnp.float32, -bound, bound)
        b = jax.random.uniform(kb, (1, fan_out), jnp.float32, -bound, bound)
        return w.astype(weight_dtype), b

    k1, k2, k3, k4 = jax.random.split(key, 4)
    w1, b1 = linear(k1, state_dim, mid_dim)
    w2, b2 = linear(k2, mid_dim, mid_dim)
    w3, b3 = linear(k3, mid_dim, mid_dim)
    w4, b4 = linear(k4, mid_dim, out_dim)
    return {"w1": w1, "b1": b1, "w2": w2, "b2": b2,
            "w3": w3, "b3": b3, "w4": w4, "b4": b4}


def _reference_forward(state, p):
    h = jnp.maximum(state @ p["w1"].astype(jnp.float32) + p["b1"], 0.0)
    h = jnp.maximum(h @ p["w2"].astype(jnp.float32) + p["b2"], 0.0)
    h = jnp.maximum(h @ p["w3"].astype(jnp.float32) + p["b3"], 0.0)
    return h @ p["w4"].astype(jnp.float32) + p["b4"]


if __name__ == "__main__":
    key = jax.random.PRNGKey(0)
    k_param, k_state = jax.random.split(key)

    # Small shapes consistent with the module; batch_tile=16 gives a 4-step
    # pipelined grid (in production use batch_tile=256-512).
    batch, state_dim, mid_dim = 64, 16, 32
    params = init_params(k_param, state_dim, mid_dim)
    state = jax.random.normal(k_state, (batch, state_dim), jnp.float32)

    out = critic_adv_forward(state, params, batch_tile=16)
    out = jax.block_until_ready(out)

    ref = _reference_forward(state, params)
    assert out.shape == (batch, 1)
    assert jnp.allclose(out, ref, atol=1e-5, rtol=1e-5)

    print("KERNEL_OK")
</pallas_src>

<mosaic_0001>
module attributes {stable_mosaic.version = 11 : i64} {
  func.func @critic_adv_kernel(%arg0: i32, %arg1: memref<16x16xf32, #tpu.memory_space<vmem>>, %arg2: memref<16x32xf32, #tpu.memory_space<vmem>>, %arg3: memref<1x32xf32, #tpu.memory_space<vmem>>, %arg4: memref<32x32xf32, #tpu.memory_space<vmem>>, %arg5: memref<1x32xf32, #tpu.memory_space<vmem>>, %arg6: memref<32x32xf32, #tpu.memory_space<vmem>>, %arg7: memref<1x32xf32, #tpu.memory_space<vmem>>, %arg8: memref<32x128xf32, #tpu.memory_space<vmem>>, %arg9: memref<1x128xf32, #tpu.memory_space<vmem>>, %arg10: memref<16x128xf32, #tpu.memory_space<vmem>>) attributes {dimension_semantics = [#tpu.dimension_semantics<parallel>], iteration_bounds = array<i64: 4>, scalar_prefetch = 0 : i64, scratch_operands = 0 : i64, tpu.core_type = #tpu.core_type<tc>, window_params = [{transform_indices = @transform_0, window_bounds = array<i64: 16, 16>}, {pipeline_mode = #tpu.pipeline_mode<synchronous>, transform_indices = @transform_1, window_bounds = array<i64: 16, 32>}, {pipeline_mode = #tpu.pipeline_mode<synchronous>, transform_indices = @transform_2, window_bounds = array<i64: 1, 32>}, {pipeline_mode = #tpu.pipeline_mode<synchronous>, transform_indices = @transform_3, window_bounds = array<i64: 32, 32>}, {pipeline_mode = #tpu.pipeline_mode<synchronous>, transform_indices = @transform_4, window_bounds = array<i64: 1, 32>}, {pipeline_mode = #tpu.pipeline_mode<synchronous>, transform_indices = @transform_5, window_bounds = array<i64: 32, 32>}, {pipeline_mode = #tpu.pipeline_mode<synchronous>, transform_indices = @transform_6, window_bounds = array<i64: 1, 32>}, {pipeline_mode = #tpu.pipeline_mode<synchronous>, transform_indices = @transform_7, window_bounds = array<i64: 32, 128>}, {pipeline_mode = #tpu.pipeline_mode<synchronous>, transform_indices = @transform_8, window_bounds = array<i64: 1, 128>}, {transform_indices = @transform_9, window_bounds = array<i64: 16, 128>}]} {
    %c0 = arith.constant 0 : index
    %c0_0 = arith.constant 0 : index
    %0 = vector.load %arg1[%c0, %c0_0] : memref<16x16xf32, #tpu.memory_space<vmem>>, vector<16x16xf32>
    %c0_1 = arith.constant 0 : index
    %c0_2 = arith.constant 0 : index
    %1 = vector.load %arg2[%c0_1, %c0_2] : memref<16x32xf32, #tpu.memory_space<vmem>>, vector<16x32xf32>
    %cst = arith.constant dense<0.000000e+00> : vector<16x32xf32>
    %2 = tpu.matmul %0, %1, %cst {dimension_numbers = #tpu.dot_dimension_numbers<[1], [0], [0], [1], [0, 0, 1, 1], [], []>} : vector<16x16xf32>, vector<16x32xf32>, vector<16x32xf32> -> vector<16x32xf32>
    %c0_3 = arith.constant 0 : index
    %c0_4 = arith.constant 0 : index
    %3 = vector.load %arg3[%c0_3, %c0_4] : memref<1x32xf32, #tpu.memory_space<vmem>>, vector<1x32xf32>
    %4 = vector.broadcast %3 : vector<1x32xf32> to vector<16x32xf32>
    %5 = arith.addf %2, %4 : vector<16x32xf32>
    %cst_5 = arith.constant 0.000000e+00 : f32
    %6 = vector.broadcast %cst_5 : f32 to vector<16x32xf32>
    %7 = arith.maximumf %5, %6 : vector<16x32xf32>
    %c0_6 = arith.constant 0 : index
    %c0_7 = arith.constant 0 : index
    %8 = vector.load %arg4[%c0_6, %c0_7] : memref<32x32xf32, #tpu.memory_space<vmem>>, vector<32x32xf32>
    %cst_8 = arith.constant dense<0.000000e+00> : vector<16x32xf32>
    %9 = tpu.matmul %7, %8, %cst_8 {dimension_numbers = #tpu.dot_dimension_numbers<[1], [0], [0], [1], [0, 0, 1, 1], [], []>} : vector<16x32xf32>, vector<32x32xf32>, vector<16x32xf32> -> vector<16x32xf32>
    %c0_9 = arith.constant 0 : index
    %c0_10 = arith.constant 0 : index
    %10 = vector.load %arg5[%c0_9, %c0_10] : memref<1x32xf32, #tpu.memory_space<vmem>>, vector<1x32xf32>
    %11 = vector.broadcast %10 : vector<1x32xf32> to vector<16x32xf32>
    %12 = arith.addf %9, %11 : vector<16x32xf32>
    %cst_11 = arith.constant 0.000000e+00 : f32
    %13 = vector.broadcast %cst_11 : f32 to vector<16x32xf32>
    %14 = arith.maximumf %12, %13 : vector<16x32xf32>
    %c0_12 = arith.constant 0 : index
    %c0_13 = arith.constant 0 : index
    %15 = vector.load %arg6[%c0_12, %c0_13] : memref<32x32xf32, #tpu.memory_space<vmem>>, vector<32x32xf32>
    %cst_14 = arith.constant dense<0.000000e+00> : vector<16x32xf32>
    %16 = tpu.matmul %14, %15, %cst_14 {dimension_numbers = #tpu.dot_dimension_numbers<[1], [0], [0], [1], [0, 0, 1, 1], [], []>} : vector<16x32xf32>, vector<32x32xf32>, vector<16x32xf32> -> vector<16x32xf32>
    %c0_15 = arith.constant 0 : index
    %c0_16 = arith.constant 0 : index
    %17 = vector.load %arg7[%c0_15, %c0_16] : memref<1x32xf32, #tpu.memory_space<vmem>>, vector<1x32xf32>
    %18 = vector.broadcast %17 : vector<1x32xf32> to vector<16x32xf32>
    %19 = arith.addf %16, %18 : vector<16x32xf32>
    %cst_17 = arith.constant 0.000000e+00 : f32
    %20 = vector.broadcast %cst_17 : f32 to vector<16x32xf32>
    %21 = arith.maximumf %19, %20 : vector<16x32xf32>
    %c0_18 = arith.constant 0 : index
    %c0_19 = arith.constant 0 : index
    %22 = vector.load %arg8[%c0_18, %c0_19] : memref<32x128xf32, #tpu.memory_space<vmem>>, vector<32x128xf32>
    %cst_20 = arith.constant dense<0.000000e+00> : vector<16x128xf32>
    %23 = tpu.matmul %21, %22, %cst_20 {dimension_numbers = #tpu.dot_dimension_numbers<[1], [0], [0], [1], [0, 0, 1, 1], [], []>} : vector<16x32xf32>, vector<32x128xf32>, vector<16x128xf32> -> vector<16x128xf32>
    %c0_21 = arith.constant 0 : index
    %c0_22 = arith.constant 0 : index
    %24 = vector.load %arg9[%c0_21, %c0_22] : memref<1x128xf32, #tpu.memory_space<vmem>>, vector<1x128xf32>
    %25 = vector.broadcast %24 : vector<1x128xf32> to vector<16x128xf32>
    %26 = arith.addf %23, %25 : vector<16x128xf32>
    %c0_23 = arith.constant 0 : index
    %c0_24 = arith.constant 0 : index
    %27 = vector.load %arg10[%c0_23, %c0_24] : memref<16x128xf32, #tpu.memory_space<vmem>>, vector<16x128xf32>
    tpu.vector_store %arg10[%c0_23, %c0_24], %26 {strides = array<i32>} : memref<16x128xf32, #tpu.memory_space<vmem>>, vector<16x128xf32>,
    return
  }
  func.func @transform_0(%arg0: i32) -> (i32, i32) {
    %c0_i32 = arith.constant 0 : i32
    %c0_i32_0 = arith.constant 0 : i32
    return %arg0, %c0_i32 : i32, i32
  }
  func.func @transform_1(%arg0: i32) -> (i32, i32) {
    %c0_i32 = arith.constant 0 : i32
    %c0_i32_0 = arith.constant 0 : i32
    %c0_i32_1 = arith.constant 0 : i32
    return %c0_i32, %c0_i32_0 : i32, i32
  }
  func.func @transform_2(%arg0: i32) -> (i32, i32) {
    %c0_i32 = arith.constant 0 : i32
    %c0_i32_0 = arith.constant 0 : i32
    %c0_i32_1 = arith.constant 0 : i32
    return %c0_i32, %c0_i32_0 : i32, i32
  }
  func.func @transform_3(%arg0: i32) -> (i32, i32) {
    %c0_i32 = arith.constant 0 : i32
    %c0_i32_0 = arith.constant 0 : i32
    %c0_i32_1 = arith.constant 0 : i32
    return %c0_i32, %c0_i32_0 : i32, i32
  }
  func.func @transform_4(%arg0: i32) -> (i32, i32) {
    %c0_i32 = arith.constant 0 : i32
    %c0_i32_0 = arith.constant 0 : i32
    %c0_i32_1 = arith.constant 0 : i32
    return %c0_i32, %c0_i32_0 : i32, i32
  }
  func.func @transform_5(%arg0: i32) -> (i32, i32) {
    %c0_i32 = arith.constant 0 : i32
    %c0_i32_0 = arith.constant 0 : i32
    %c0_i32_1 = arith.constant 0 : i32
    return %c0_i32, %c0_i32_0 : i32, i32
  }
  func.func @transform_6(%arg0: i32) -> (i32, i32) {
    %c0_i32 = arith.constant 0 : i32
    %c0_i32_0 = arith.constant 0 : i32
    %c0_i32_1 = arith.constant 0 : i32
    return %c0_i32, %c0_i32_0 : i32, i32
  }
  func.func @transform_7(%arg0: i32) -> (i32, i32) {
    %c0_i32 = arith.constant 0 : i32
    %c0_i32_0 = arith.constant 0 : i32
    %c0_i32_1 = arith.constant 0 : i32
    return %c0_i32, %c0_i32_0 : i32, i32
  }
  func.func @transform_8(%arg0: i32) -> (i32, i32) {
    %c0_i32 = arith.constant 0 : i32
    %c0_i32_0 = arith.constant 0 : i32
    %c0_i32_1 = arith.constant 0 : i32
    return %c0_i32, %c0_i32_0 : i32, i32
  }
  func.func @transform_9(%arg0: i32) -> (i32, i32) {
    %c0_i32 = arith.constant 0 : i32
    %c0_i32_0 = arith.constant 0 : i32
    return %arg0, %c0_i32 : i32, i32
  }
}

</mosaic_0001>

<bundles_post_ra>
// kernel: tpu_custom_call.1
= control target key start
LH: loop header
LB: loop body
LE: loop exit
PB: predicated region body
PF: predicated region fallthrough
CT: control target
= control target key end

     0   :  { %14 = vsyncpa [#allocation3], 0  ;;  %s975_s0 = inlined_call_operand.vmem [shape: f32[64,16], index: 0, kind: input, shape index: {}]   ;;  %s976_s1 = inlined_call_operand.vmem [shape: f32[16,32], index: 1, kind: input, shape index: {}]   ;;  %s977_s2 = inlined_call_operand.vmem [shape: f32[1,32], index: 2, kind: input, shape index: {}]   ;;  %s978_s3 = inlined_call_operand.vmem [shape: f32[32,32], index: 3, kind: input, shape index: {}]   ;;  %s979_s4 = inlined_call_operand.vmem [shape: f32[1,32], index: 4, kind: input, shape index: {}]   ;;  %s980_s5 = inlined_call_operand.vmem [shape: f32[32,32], index: 5, kind: input, shape index: {}]   ;;  %s981_s6 = inlined_call_operand.vmem [shape: f32[1,32], index: 6, kind: input, shape index: {}]   ;;  %s982_s7 = inlined_call_operand.hbm [shape: f32[32,128], index: 7, kind: input, shape index: {}]   ;;  %s983_s8 = inlined_call_operand.vmem [shape: f32[1,128], index: 8, kind: input, shape index: {}]   ;;  %s984_s9 = inlined_call_operand.hbm [shape: f32[64,128], index: 9, kind: output, shape index: {}]  }
   0x1   :  { %15 = vsyncpa [#allocation4], 0 }
   0x2   :  { %17 = vsyncpa [#allocation4 + $0x1], 0  ;;  %s833_s30 = smov 0   ;;  %s835_s10 = smov 0  }
   0x3   :  { %s837_s11 = smov 0   ;;  %s839_s12 = smov 0  }
   0x4 LB: > { %s854_s13 = sadd.s32 4294967295, %s776_s12   ;;  %s599_s14 = sadd.s32 4294967294, %s776_s12   ;;  %s776_s12 = sphi %s839_s12, %s990_s12   ;;  %s772_s11 = sphi %s837_s11, %s989_s11   ;;  %s768_s10 = sphi %s835_s10, %s988_s10   ;;  %s764_s30 = sphi %s833_s30, %s987_s30  }
   0x5   : > { %s858_s15 = sadd.s32 1, %s776_s12   ;;  %s224_s16 = sadd.s32 1, %s772_s11 }
   0x6   : > { %s221_s17 = ssub.s32 %s776_s12, %s858_s15  ;;  %p234_p0 = scmp.ne.s32.totalorder %s772_s11, %s768_s10 }
   0x7   : > { %p222_p1 = scmp.eq.s32.totalorder %s221_s17, 0  ;;  %p235_p2 = scmp.eq.s32.totalorder %s854_s13, 3 }
   0x8   : > { %p240_p3 = scmp.ne.s32.totalorder %s768_s10, %s764_s30  ;;  %p241_p4 = scmp.eq.s32.totalorder %s599_s14, 3 }
   0x9   : > { %s869_s18 = scalar_select %p222_p1, %s772_s11, %s224_s16  }
   0xa   : > { %p871_p5 = por %p235_p2, %p234_p0  ;;  %p875_p6 = por %p241_p4, %p240_p3 }
   0xb   : > { %p600_p7 = scmp.ge.s32.totalorder %s776_s12, 1  ;;  %p248_p8 = scmp.lt.s32.totalorder %s776_s12, 5 }
   0xc   : > { %p636_p9 = scmp.eq.s32.totalorder %s854_s13, 0  ;;  %s277_s23 = sshll.u32 %s982_s7, 4  ;;  %s278_s23 = int_to_ptr.hbm [resolvable:$true] %s277_s23 }
   0xd   : > { %p249_p10 = pnand %p600_p7, %p248_p8  ;;  %s778_s24 = smov [#allocation2]  }
   0xe   : > { %s279_s25 = sshll.u32 %s778_s24, 4  ;;  %s779_s26 = smov 128   ;;  %s280_s25 = int_to_ptr.vmem [resolvable:$true] %s279_s25 }
   0xf   : > { %p628_p11 = pneg %p249_p10  ;;  %s780_s27 = smov 8  }
  0x10   : > { %307 = sbr.rel (%p249_p10) target bundleno = 571 (0x23b), region = 56 }
  0x11   : > { %p629_p12 = pnand %p636_p9, %p628_p11 }
  0x13   : > { %631 = dma.hbm_to_vmem [thread:$0]  (!%p629_p12), %s278_s23, 512, %s280_s25, [#allocation3], %s779_s26, %s779_s26, %s780_s27  }
  0x15   : > { %755 = dma.done.wait (%p636_p9), [#allocation3], 512  }
  0x16   : > { %757 = vsyncadd (%p636_p9), [#allocation3], 4294966784  ;;  %s606_s28 = sshll.u32 %s854_s13, 1  ;;  %v354_v0 = vld [vmem:[%s976_s1 + $0x8] sm:$0xff]  ;;  %v353_v1 = vld [vmem:[%s976_s1] sm:$0xff]  ;;  %vm359_vm0 = vcmask 130048  }
  0x17   : > { %p345_p13 = scmp.lt.s32.totalorder %s606_s28, 7  ;;  %380 = vmatpush.msra.mxu0 %v354_v0  ;;  %v394_v3 = vld [vmem:[%s978_s3 + $0x18] sm:$0xff]  ;;  %v393_v5 = vld [vmem:[%s978_s3 + $0x10] sm:$0xff]  ;;  %v392_v6 = vld [vmem:[%s978_s3 + $0x8] sm:$0xff]  ;;  %vm399_vm1 = vcmask 261120   ;;  %s621_s27 = sshll.u32 %s854_s13, 4 }
  0x18   : > { %418 = vmatpush.msra.mxu1 %v394_v3  ;;  %v391_v7 = vld [vmem:[%s978_s3] sm:$0xff]  ;;  %v434_v8 = vld [vmem:[%s980_s5 + $0x18] sm:$0xff]  ;;  %v433_v16 = vld [vmem:[%s980_s5 + $0x10] sm:$0xff]  ;;  %s521_s14 = scalar_lea.hbm %s984_s9, %s621_s27 }
  0x19   : > { %s992_s28 = smov (!%p345_p13, %s606_s28), 7  ;;  %381 = vmatpush.msra.mxu0 %v353_v1  ;;  %457 = vmatpush.msra.mxu2 %v434_v8  ;;  %v676_v9 = vld [vmem:[%s977_s2] ss:$0 sm:$0xff]  ;;  %v432_v17 = vld [vmem:[%s980_s5 + $0x8] sm:$0xff]  ;;  %v473_v19 = vld [vmem:[#allocation2 + $0x18] sm:$0xff]  ;;  %s524_s22 = sshll.u32 %s521_s14, 4  ;;  %s525_s22 = int_to_ptr.hbm [resolvable:$true] %s524_s22 }
  0x1a   : > { %s607_s29 = sshll.u32 %s992_s28, 3  ;;  %419 = vmatpush.msra.mxu1 %v393_v5  ;;  %v431_v18 = vld [vmem:[%s980_s5] sm:$0xff]  ;;  %496 = vmatpush.msra.mxu3 %v473_v19  ;;  %v472_v27 = vld [vmem:[#allocation2 + $0x10] sm:$0xff]  ;;  %v471_v28 = vld [vmem:[#allocation2 + $0x8] sm:$0xff]  ;;  %s724_s25 = sshra.s32 %s525_s22, 4  ;;  %s725_s25 = int_to_ptr.hbm [resolvable:$true] %s724_s25 }
  0x1b   : > { %s348_s17 = scalar_lea.vmem %s975_s0, %s607_s29  ;;  %458 = vmatpush.msra.mxu2 %v433_v16  ;;  %v677_v20 = vld [vmem:[%s979_s4] ss:$0 sm:$0xff]  ;;  %s726_s13 = scalar_lea.hbm %s725_s25, 16 }
  0x1c   : > { %v351_v2 = vld [vmem:[%s348_s17] sm:$0xff]  ;;  %v352_v4 = vld [vmem:[%s348_s17 + $0x8] sm:$0xff]  ;;  %420 = vmatpush.msra.mxu1 %v392_v6  ;;  %497 = vmatpush.msra.mxu3 %v472_v27  ;;  %s341_s17 = sand.u32 1, %s768_s10   ;;  %p727_p0 = scmp.ne.s32.totalorder %s725_s25, %s726_s13 }
  0x1d   : > { %608 = vmatmul.msk.f32.vlgmr.msra.gmra.mxu0 %vm359_vm0, %v351_v2  ;;  %459 = vmatpush.msra.mxu2 %v432_v17  ;;  %v470_v29 = vld [vmem:[#allocation2] sm:$0xff]  ;;  %s605_s24 = sshll.u32 %s341_s17, 4  ;;  %s510_s23 = scalar_lea.sflag [#allocation4], %s341_s17 }
  0x1e   : > { %421 = vmatpush.msra.mxu1 %v391_v7  ;;  %498 = vmatpush.msra.mxu3 %v471_v28  ;;  %v678_v30 = vld [vmem:[%s981_s6] ss:$0 sm:$0xff]  ;;  %s343_s16 = scalar_lea.vmem [#allocation5], %s605_s24  ;;  %p728_p1 = pnand %p727_p0, %p871_p5 }
  0x1f   : > { %460 = vmatpush.msra.mxu2 %v431_v18  ;;  %v679_v37 = vld [vmem:[%s983_s8] ss:$0 sm:$0xff]  ;;  %s522_s21 = sshll.u32 %s343_s16, 4  ;;  %s730_s24 = scalar_lea.hbm %s984_s9, 64  ;;  %s523_s21 = int_to_ptr.vmem [resolvable:$true] %s522_s21 }
  0x20   : > { %499 = vmatpush.msra.mxu3 %v470_v29  ;;  %p729_p2 = pneg %p728_p1  ;;  %p731_p3 = scmp.lt.s32.totalorder %s725_s25, %s984_s9 }
  0x21   : > { %p732_p4 = scmp.lt.s32.totalorder %s730_s24, %s726_s13 }
  0x23   : > { %p733_p7 = por %p732_p4, %p731_p3 }
  0x25   : > { %609 = vmatmul.msk.f32.gmra.mxu0 %vm359_vm0, %v352_v4  ;;  %p734_p8 = pnand %p733_p7, %p729_p2 }
  0x9a   : > { %v383_v10 = vpop.f32.mrf.mxu0 }
  0x9b   : > { %v384_v11 = vadd.f32 %v676_v9, %v383_v10 }
  0x9d   : > { %v389_v12 = vmax.f32 %v384_v11, 0.0 }
  0x9f   : > { %610 = vmatmul.msk.f32.vlgmr.msra.gmra.mxu1 %vm399_vm1, %v389_v12 }
  0xa2   : > { %v386_v13 = vpop.f32.mrf.mxu0 }
  0xa3   : > { %v387_v14 = vadd.f32 %v676_v9, %v386_v13 }
  0xa5   : > { %v390_v15 = vmax.f32 %v387_v14, 0.0 }
  0xa7   : > { %611 = vmatmul.msk.f32.gmra.mxu1 %vm399_vm1, %v390_v15 }
 0x11c   : > { %v423_v21 = vpop.f32.mrf.mxu1 }
 0x11d   : > { %v424_v22 = vadd.f32 %v677_v20, %v423_v21 }
 0x11f   : > { %v429_v23 = vmax.f32 %v424_v22, 0.0 }
 0x121   : > { %612 = vmatmul.msk.f32.vlgmr.msra.gmra.mxu2 %vm399_vm1, %v429_v23 }
 0x124   : > { %v426_v24 = vpop.f32.mrf.mxu1 }
 0x125   : > { %v427_v25 = vadd.f32 %v677_v20, %v426_v24 }
 0x127   : > { %v430_v26 = vmax.f32 %v427_v25, 0.0 }
 0x129   : > { %613 = vmatmul.msk.f32.gmra.mxu2 %vm399_vm1, %v430_v26 }
 0x1a4   : > { %v462_v31 = vpop.f32.mrf.mxu2 }
 0x1a5   : > { %v463_v32 = vadd.f32 %v678_v30, %v462_v31 }
 0x1a7   : > { %v468_v33 = vmax.f32 %v463_v32, 0.0 }
 0x1a9   : > { %614 = vmatmul.msk.f32.vlgmr.msra.gmra.mxu3 %vm399_vm1, %v468_v33 }
 0x1ac   : > { %v465_v34 = vpop.f32.mrf.mxu2 }
 0x1ad   : > { %v466_v35 = vadd.f32 %v678_v30, %v465_v34 }
 0x1af   : > { %v469_v36 = vmax.f32 %v466_v35, 0.0 }
 0x1b1   : > { %615 = vmatmul.msk.f32.gmra.mxu3 %vm399_vm1, %v469_v36 }
 0x22c   : > { %v501_v38 = vpop.f32.mrf.mxu3 }
 0x22d   : > { %v502_v39 = vadd.f32 %v679_v37, %v501_v38 }
 0x22f   : > { %507 = vst [vmem:[%s343_s16] sm:$0xff] %v502_v39 }
 0x234   : > { %v504_v40 = vpop.f32.mrf.mxu3 }
 0x235   : > { %v505_v41 = vadd.f32 %v679_v37, %v504_v40 }
 0x237   : > { %508 = vst [vmem:[%s343_s16 + $0x8] sm:$0xff] %v505_v41 }
 0x238   : > { %737 = shalt.err (!%p734_p8)
}
 0x239   : > { %s781_s17 = smov 128   ;;  %s782_s14 = smov 8  }
 0x23a   : > { %626 = dma.vmem_to_hbm [thread:$0]  (%p871_p5), %s523_s21, 256, %s525_s22, %s510_s23, %s781_s17, %s781_s17, %s782_s14  }
 0x23b PF: > { %p638_p9 = scmp.ge.s32.totalorder %s776_s12, 2  ;;  %s539_s16 = sand.u32 1, %s764_s30  }
 0x23c   : > { %s540_s26 = scalar_lea.sflag [#allocation4], %s539_s16 }
 0x23d   : > { %p633_p10 = pnand %p638_p9, %p875_p6 }
 0x23f   : > { %p634_p11 = pneg %p633_p10 }
 0x241   : > { %759 = dma.done.wait (%p634_p11), %s540_s26, 256  }
 0x242   : > { %761 = vsyncadd (%p634_p11), %s540_s26, 4294967040  ;;  %p20_p12 = scmp.ge.s32.totalorder %s858_s15, 6   ;;  %s987_s30 = smov %s768_s10 }
 0x243   : > { %s988_s10 = smov %s772_s11  ;;  %s989_s11 = smov %s869_s18 }
 0x244   : > { %s990_s12 = smov %s858_s15  ;;  %22 = sbr.rel (!%p20_p12) target bundleno = 4 (0x4), region = 96 }
 0x249   :  { %546 = vsyncpa [#allocation3], 1 }
 0x24a   :  { %548 = vsyncpa [#allocation3 + $0x1], 1 }
 0x24b   :  { %549 = vsyncpa [#allocation4], 1 }
 0x24c   :  { %551 = vsyncpa [#allocation4 + $0x1], 1 }

</bundles_post_ra>
